<compile_context>
chip_gen: v6e
topology: v6e:2x2x1
jax: 0.10.0
libtpu: 0.0.40
codegen_flags: <defaults>
</compile_context>

<pallas_src>
import functools

import jax
import jax.numpy as jnp
from jax.experimental import pallas as pl
from jax.experimental.pallas import tpu as pltpu


# ----------------------------- Pallas kernel: GRU recurrence (one layer, both directions) ------------

def _gru_recurrence_kernel(xp_ref, h0_ref, whh_ref, bhn_ref, out_ref, hn_ref, *, hidden):
    """One grid step = one direction of one layer, full sequence in VMEM.

    xp_ref : (seq, batch, 3*hidden)  precomputed x@W_ih + (b_ih + [b_hh_r, b_hh_z, 0]) (r,z,n order)
    h0_ref : (batch, hidden)
    whh_ref: (hidden, 3*hidden)      fused hidden->gates weight
    bhn_ref: (1, hidden)             b_hh for the n gate (must be scaled by r)
    out_ref: (seq, batch, hidden)
    hn_ref : (batch, hidden)
    """
    H = hidden
    seq = xp_ref.shape[0]
    d = pl.program_id(0)
    reverse = d == 1                       # direction 1 processes the sequence back-to-front

    w_hh = whh_ref[...]                    # hoisted loads (loop below is unrolled)
    b_hn = bhn_ref[...]

    def step(t, h_prev):
        t_x = jnp.where(reverse, seq - 1 - t, t)
        xp_t = xp_ref[t_x]                                                 # (batch, 3H)
        hp = jnp.dot(h_prev, w_hh, preferred_element_type=jnp.float32)     # single fused matmul
        # PyTorch GRU gate order: r, z, n
        r = jax.nn.sigmoid(xp_t[:, :H] + hp[:, :H])
        z = jax.nn.sigmoid(xp_t[:, H:2 * H] + hp[:, H:2 * H])
        n = jnp.tanh(xp_t[:, 2 * H:] + r * (hp[:, 2 * H:] + b_hn))
        h_new = (1.0 - z) * n + z * h_prev
        out_ref[t_x] = h_new
        return h_new

    # Short fixed trip count -> full unroll gives the LLO scheduler visibility.
    h_last = jax.lax.fori_loop(0, seq, step, h0_ref[...], unroll=True)
    hn_ref[...] = h_last                   # written once, at the end (no per-step store)


def gru_recurrence(xp, h0, w_hh, b_hn):
    """Run the GRU recurrence for all directions of one layer.

    xp   : (num_dirs, seq, batch, 3*hidden)
    h0   : (num_dirs, batch, hidden)
    w_hh : (num_dirs, hidden, 3*hidden)
    b_hn : (num_dirs, 1, hidden)
    returns out: (num_dirs, seq, batch, hidden), h_n: (num_dirs, batch, hidden)
    """
    num_dirs, seq, batch, g3 = xp.shape
    hidden = h0.shape[-1]

    grid_spec = pltpu.PrefetchScalarGridSpec(
        num_scalar_prefetch=0,
        grid=(num_dirs,),
        in_specs=[
            pl.BlockSpec((None, seq, batch, g3), lambda d: (d, 0, 0, 0)),     # xp (per direction)
            pl.BlockSpec((None, batch, hidden), lambda d: (d, 0, 0)),         # h0
            pl.BlockSpec((None, hidden, g3), lambda d: (d, 0, 0)),            # fused W_hh
            pl.BlockSpec((None, 1, hidden), lambda d: (d, 0, 0)),             # b_hh_n
        ],
        out_specs=(
            pl.BlockSpec((None, seq, batch, hidden), lambda d: (d, 0, 0, 0)),  # per-direction outputs
            pl.BlockSpec((None, batch, hidden), lambda d: (d, 0, 0)),          # final hidden
        ),
    )

    out, h_n = pl.pallas_call(
        functools.partial(_gru_recurrence_kernel, hidden=hidden),
        out_shape=(
            jax.ShapeDtypeStruct((num_dirs, seq, batch, hidden), jnp.float32),
            jax.ShapeDtypeStruct((num_dirs, batch, hidden), jnp.float32),
        ),
        grid_spec=grid_spec,
        compiler_params=pltpu.CompilerParams(
            # directions are independent -> lets v7x shard them across its two TensorCores
            dimension_semantics=("parallel",),
        ),
    )(xp, h0, w_hh, b_hn)
    return out, h_n


# ----------------------------- Encoder wrapper -----------------------------

def encoder_gru_forward(x, h, params, num_layers, bidirectional):
    """Equivalent of EncoderGRU.forward (PyTorch nn.GRU semantics).

    x: (seq, batch, input_size); h: (num_layers*num_dirs, batch, hidden)
    returns output (seq, batch, num_dirs*hidden), h_n (num_layers*num_dirs, batch, hidden)
    """
    num_dirs = 2 if bidirectional else 1
    seq, batch, _ = x.shape
    hidden = h.shape[-1]
    h = h.reshape(num_layers, num_dirs, batch, hidden)

    prev = x[None]                                  # (prev_dirs=1, seq, batch, input_size)
    h_n_parts = []
    for layer in range(num_layers):
        w_ih, w_hh, b_ih, b_hh = params[layer]
        H = hidden
        # Fold b_ih + b_hh for r/z into the hoisted projection; b_ih only for n.
        bias_x = jnp.concatenate([b_ih[:, :2 * H] + b_hh[:, :2 * H], b_ih[:, 2 * H:]], axis=-1)
        b_hn = b_hh[:, 2 * H:].reshape(num_dirs, 1, H)

        # Hoisted, fused input projection for the whole sequence & both directions (one big
        # matmul with M=seq*batch, done in XLA). Contracting over (prev_dir, feature) also
        # replaces the explicit concat of the previous layer's direction outputs.
        xp = jnp.einsum('psbf,dpfg->dsbg', prev, w_ih) + bias_x[:, None, None, :]

        out, h_last = gru_recurrence(xp, h[layer], w_hh, b_hn)
        h_n_parts.append(h_last)
        prev = out                                   # (num_dirs, seq, batch, hidden)

    # Single final re-layout to the PyTorch output format (only once, for the last layer).
    output = jnp.transpose(prev, (1, 2, 0, 3)).reshape(seq, batch, num_dirs * hidden)
    h_n = jnp.concatenate(h_n_parts, axis=0)         # (num_layers*num_dirs, batch, hidden)
    return output, h_n


# ----------------------------- Pure-JAX reference (for correctness check) -----------------------------

def _ref_gru_dir(x, h0, w_ih, w_hh, b_ih, b_hh, hidden):
    H = hidden

    def step(h_prev, x_t):
        gi = x_t @ w_ih + b_ih
        gh = h_prev @ w_hh + b_hh
        r = jax.nn.sigmoid(gi[:, :H] + gh[:, :H])
        z = jax.nn.sigmoid(gi[:, H:2 * H] + gh[:, H:2 * H])
        n = jnp.tanh(gi[:, 2 * H:] + r * gh[:, 2 * H:])
        h_new = (1.0 - z) * n + z * h_prev
        return h_new, h_new

    h_last, outs = jax.lax.scan(step, h0, x)
    return outs, h_last


def _ref_encoder(x, h, params, num_layers, bidirectional, hidden):
    num_dirs = 2 if bidirectional else 1
    batch = x.shape[1]
    h = h.reshape(num_layers, num_dirs, batch, hidden)
    layer_in = x
    h_n_list = []
    for layer in range(num_layers):
        w_ih, w_hh, b_ih, b_hh = params[layer]
        dir_outs = []
        for d in range(num_dirs):
            w_ih_d = w_ih[d].reshape(-1, 3 * hidden)      # (prev_dirs*prev_dim, 3H)
            x_dir = layer_in if d == 0 else jnp.flip(layer_in, axis=0)
            out, h_last = _ref_gru_dir(x_dir, h[layer, d], w_ih_d, w_hh[d], b_ih[d], b_hh[d], hidden)
            if d == 1:
                out = jnp.flip(out, axis=0)
            dir_outs.append(out)
            h_n_list.append(h_last)
        layer_in = jnp.concatenate(dir_outs, axis=-1)
    return layer_in, jnp.stack(h_n_list, axis=0)


# ----------------------------- Deterministic parameter init -----------------------------

def init_params(key, input_size, hidden_size, num_layers, num_dirs):
    """Gate-fused parameter layout, PyTorch gate order (r, z, n) along the last axis."""
    params = []
    bound = 1.0 / float(hidden_size) ** 0.5
    for layer in range(num_layers):
        prev_dirs = 1 if layer == 0 else num_dirs
        prev_dim = input_size if layer == 0 else hidden_size
        key, k1, k2, k3, k4 = jax.random.split(key, 5)
        w_ih = jax.random.uniform(k1, (num_dirs, prev_dirs, prev_dim, 3 * hidden_size),
                                  jnp.float32, -bound, bound)
        w_hh = jax.random.uniform(k2, (num_dirs, hidden_size, 3 * hidden_size),
                                  jnp.float32, -bound, bound)
        b_ih = jax.random.uniform(k3, (num_dirs, 3 * hidden_size), jnp.float32, -bound, bound)
        b_hh = jax.random.uniform(k4, (num_dirs, 3 * hidden_size), jnp.float32, -bound, bound)
        params.append((w_ih, w_hh, b_ih, b_hh))
    return params


# ----------------------------- Main -----------------------------

if __name__ == "__main__":
    SEQ_LEN = 8
    BATCH = 2
    INPUT_SIZE = 16
    HIDDEN = 32
    NUM_LAYERS = 2
    BIDIRECTIONAL = True
    NUM_DIRS = 2 if BIDIRECTIONAL else 1

    key = jax.random.PRNGKey(0)
    kx, kp = jax.random.split(key, 2)

    x = jax.random.normal(kx, (SEQ_LEN, BATCH, INPUT_SIZE), jnp.float32)
    # hidden state "usually initialized to zero" per the module docstring
    h = jnp.zeros((NUM_LAYERS * NUM_DIRS, BATCH, HIDDEN), jnp.float32)

    params = init_params(kp, INPUT_SIZE, HIDDEN, NUM_LAYERS, NUM_DIRS)

    fwd = functools.partial(encoder_gru_forward,
                            num_layers=NUM_LAYERS, bidirectional=BIDIRECTIONAL)
    output, h_n = jax.jit(fwd)(x, h, params)
    output = jax.block_until_ready(output)
    h_n = jax.block_until_ready(h_n)

    assert output.shape == (SEQ_LEN, BATCH, NUM_DIRS * HIDDEN)
    assert h_n.shape == (NUM_LAYERS * NUM_DIRS, BATCH, HIDDEN)

    # correctness check against a pure-JAX reference GRU (unfused/unfolded math)
    ref_out, ref_hn = _ref_encoder(x, h, params, NUM_LAYERS, BIDIRECTIONAL, HIDDEN)
    assert jnp.allclose(output, ref_out, atol=1e-4, rtol=1e-4)
    assert jnp.allclose(h_n, ref_hn, atol=1e-4, rtol=1e-4)

    print("KERNEL_OK")
</pallas_src>

<mosaic_0001>
module attributes {stable_mosaic.version = 11 : i64} {
  func.func @_gru_recurrence_kernel(%arg0: i32, %arg1: memref<1x8x2x96xf32, #tpu.memory_space<vmem>>, %arg2: memref<1x2x32xf32, #tpu.memory_space<vmem>>, %arg3: memref<1x32x96xf32, #tpu.memory_space<vmem>>, %arg4: memref<1x1x32xf32, #tpu.memory_space<vmem>>, %arg5: memref<1x8x2x32xf32, #tpu.memory_space<vmem>>, %arg6: memref<1x2x32xf32, #tpu.memory_space<vmem>>) attributes {dimension_semantics = [#tpu.dimension_semantics<parallel>], iteration_bounds = array<i64: 2>, scalar_prefetch = 0 : i64, scratch_operands = 0 : i64, tpu.core_type = #tpu.core_type<tc>, window_params = [{transform_indices = @transform_0, window_bounds = array<i64: 1, 8, 2, 96>}, {transform_indices = @transform_1, window_bounds = array<i64: 1, 2, 32>}, {transform_indices = @transform_2, window_bounds = array<i64: 1, 32, 96>}, {transform_indices = @transform_3, window_bounds = array<i64: 1, 1, 32>}, {transform_indices = @transform_4, window_bounds = array<i64: 1, 8, 2, 32>}, {transform_indices = @transform_5, window_bounds = array<i64: 1, 2, 32>}]} {
    %c1_i32 = arith.constant 1 : i32
    %0 = arith.cmpi eq, %arg0, %c1_i32 : i32
    %c0 = arith.constant 0 : index
    %c0_0 = arith.constant 0 : index
    %c0_1 = arith.constant 0 : index
    %1 = vector.load %arg3[%c0, %c0_0, %c0_1] : memref<1x32x96xf32, #tpu.memory_space<vmem>>, vector<1x32x96xf32>
    %2 = vector.shape_cast %1 : vector<1x32x96xf32> to vector<32x96xf32>
    %c0_2 = arith.constant 0 : index
    %c0_3 = arith.constant 0 : index
    %c0_4 = arith.constant 0 : index
    %3 = vector.load %arg4[%c0_2, %c0_3, %c0_4] : memref<1x1x32xf32, #tpu.memory_space<vmem>>, vector<1x1x32xf32>
    %4 = vector.shape_cast %3 : vector<1x1x32xf32> to vector<1x32xf32>
    %c0_5 = arith.constant 0 : index
    %c0_6 = arith.constant 0 : index
    %c0_7 = arith.constant 0 : index
    %5 = vector.load %arg2[%c0_5, %c0_6, %c0_7] : memref<1x2x32xf32, #tpu.memory_space<vmem>>, vector<1x2x32xf32>
    %6 = vector.shape_cast %5 : vector<1x2x32xf32> to vector<2x32xf32>
    %c0_i32 = arith.constant 0 : i32
    %c7_i32 = arith.constant 7 : i32
    %7 = arith.subi %c7_i32, %c0_i32 : i32
    %8 = arith.select %0, %7, %c0_i32 : i32
    %c0_8 = arith.constant 0 : index
    %9 = arith.index_cast %8 : i32 to index
    %c0_9 = arith.constant 0 : index
    %c0_10 = arith.constant 0 : index
    %10 = vector.load %arg1[%c0_8, %9, %c0_9, %c0_10] : memref<1x8x2x96xf32, #tpu.memory_space<vmem>>, vector<1x1x2x96xf32>
    %11 = vector.shape_cast %10 : vector<1x1x2x96xf32> to vector<2x96xf32>
    %cst = arith.constant dense<0.000000e+00> : vector<2x96xf32>
    %12 = tpu.matmul %6, %2, %cst {dimension_numbers = #tpu.dot_dimension_numbers<[1], [0], [0], [1], [0, 0, 1, 1], [], []>} : vector<2x32xf32>, vector<32x96xf32>, vector<2x96xf32> -> vector<2x96xf32>
    %13 = vector.extract_strided_slice %11 {offsets = [0, 0], sizes = [2, 32], strides = [1, 1]} : vector<2x96xf32> to vector<2x32xf32>
    %14 = vector.extract_strided_slice %12 {offsets = [0, 0], sizes = [2, 32], strides = [1, 1]} : vector<2x96xf32> to vector<2x32xf32>
    %15 = arith.addf %13, %14 : vector<2x32xf32>
    %16 = arith.negf %15 : vector<2x32xf32>
    %17 = math.exp %16 : vector<2x32xf32>
    %cst_11 = arith.constant 1.000000e+00 : f32
    %18 = vector.broadcast %cst_11 : f32 to vector<2x32xf32>
    %19 = arith.addf %18, %17 : vector<2x32xf32>
    %20 = arith.divf %18, %19 : vector<2x32xf32>
    %21 = vector.extract_strided_slice %11 {offsets = [0, 32], sizes = [2, 32], strides = [1, 1]} : vector<2x96xf32> to vector<2x32xf32>
    %22 = vector.extract_strided_slice %12 {offsets = [0, 32], sizes = [2, 32], strides = [1, 1]} : vector<2x96xf32> to vector<2x32xf32>
    %23 = arith.addf %21, %22 : vector<2x32xf32>
    %24 = arith.negf %23 : vector<2x32xf32>
    %25 = math.exp %24 : vector<2x32xf32>
    %cst_12 = arith.constant 1.000000e+00 : f32
    %26 = vector.broadcast %cst_12 : f32 to vector<2x32xf32>
    %27 = arith.addf %26, %25 : vector<2x32xf32>
    %28 = arith.divf %26, %27 : vector<2x32xf32>
    %29 = vector.extract_strided_slice %11 {offsets = [0, 64], sizes = [2, 32], strides = [1, 1]} : vector<2x96xf32> to vector<2x32xf32>
    %30 = vector.extract_strided_slice %12 {offsets = [0, 64], sizes = [2, 32], strides = [1, 1]} : vector<2x96xf32> to vector<2x32xf32>
    %31 = vector.broadcast %4 : vector<1x32xf32> to vector<2x32xf32>
    %32 = arith.addf %30, %31 : vector<2x32xf32>
    %33 = arith.mulf %20, %32 : vector<2x32xf32>
    %34 = arith.addf %29, %33 : vector<2x32xf32>
    %35 = math.tanh %34 : vector<2x32xf32>
    %cst_13 = arith.constant 1.000000e+00 : f32
    %36 = vector.broadcast %cst_13 : f32 to vector<2x32xf32>
    %37 = arith.subf %36, %28 : vector<2x32xf32>
    %38 = arith.mulf %37, %35 : vector<2x32xf32>
    %39 = arith.mulf %28, %6 : vector<2x32xf32>
    %40 = arith.addf %38, %39 : vector<2x32xf32>
    %c0_14 = arith.constant 0 : index
    %41 = arith.index_cast %8 : i32 to index
    %c0_15 = arith.constant 0 : index
    %c0_16 = arith.constant 0 : index
    %42 = vector.load %arg5[%c0_14, %41, %c0_15, %c0_16] : memref<1x8x2x32xf32, #tpu.memory_space<vmem>>, vector<1x1x2x32xf32>
    %43 = vector.shape_cast %42 : vector<1x1x2x32xf32> to vector<2x32xf32>
    %44 = vector.shape_cast %40 : vector<2x32xf32> to vector<1x1x2x32xf32>
    tpu.vector_store %arg5[%c0_14, %41, %c0_15, %c0_16], %44 {strides = array<i32>} : memref<1x8x2x32xf32, #tpu.memory_space<vmem>>, vector<1x1x2x32xf32>,
    %c1_i32_17 = arith.constant 1 : i32
    %c7_i32_18 = arith.constant 7 : i32
    %45 = arith.subi %c7_i32_18, %c1_i32_17 : i32
    %46 = arith.select %0, %45, %c1_i32_17 : i32
    %c0_19 = arith.constant 0 : index
    %47 = arith.index_cast %46 : i32 to index
    %c0_20 = arith.constant 0 : index
    %c0_21 = arith.constant 0 : index
    %48 = vector.load %arg1[%c0_19, %47, %c0_20, %c0_21] : memref<1x8x2x96xf32, #tpu.memory_space<vmem>>, vector<1x1x2x96xf32>
    %49 = vector.shape_cast %48 : vector<1x1x2x96xf32> to vector<2x96xf32>
    %cst_22 = arith.constant dense<0.000000e+00> : vector<2x96xf32>
    %50 = tpu.matmul %40, %2, %cst_22 {dimension_numbers = #tpu.dot_dimension_numbers<[1], [0], [0], [1], [0, 0, 1, 1], [], []>} : vector<2x32xf32>, vector<32x96xf32>, vector<2x96xf32> -> vector<2x96xf32>
    %51 = vector.extract_strided_slice %49 {offsets = [0, 0], sizes = [2, 32], strides = [1, 1]} : vector<2x96xf32> to vector<2x32xf32>
    %52 = vector.extract_strided_slice %50 {offsets = [0, 0], sizes = [2, 32], strides = [1, 1]} : vector<2x96xf32> to vector<2x32xf32>
    %53 = arith.addf %51, %52 : vector<2x32xf32>
    %54 = arith.negf %53 : vector<2x32xf32>
    %55 = math.exp %54 : vector<2x32xf32>
    %cst_23 = arith.constant 1.000000e+00 : f32
    %56 = vector.broadcast %cst_23 : f32 to vector<2x32xf32>
    %57 = arith.addf %56, %55 : vector<2x32xf32>
    %58 = arith.divf %56, %57 : vector<2x32xf32>
    %59 = vector.extract_strided_slice %49 {offsets = [0, 32], sizes = [2, 32], strides = [1, 1]} : vector<2x96xf32> to vector<2x32xf32>
    %60 = vector.extract_strided_slice %50 {offsets = [0, 32], sizes = [2, 32], strides = [1, 1]} : vector<2x96xf32> to vector<2x32xf32>
    %61 = arith.addf %59, %60 : vector<2x32xf32>
    %62 = arith.negf %61 : vector<2x32xf32>
    %63 = math.exp %62 : vector<2x32xf32>
    %cst_24 = arith.constant 1.000000e+00 : f32
    %64 = vector.broadcast %cst_24 : f32 to vector<2x32xf32>
    %65 = arith.addf %64, %63 : vector<2x32xf32>
    %66 = arith.divf %64, %65 : vector<2x32xf32>
    %67 = vector.extract_strided_slice %49 {offsets = [0, 64], sizes = [2, 32], strides = [1, 1]} : vector<2x96xf32> to vector<2x32xf32>
    %68 = vector.extract_strided_slice %50 {offsets = [0, 64], sizes = [2, 32], strides = [1, 1]} : vector<2x96xf32> to vector<2x32xf32>
    %69 = vector.broadcast %4 : vector<1x32xf32> to vector<2x32xf32>
    %70 = arith.addf %68, %69 : vector<2x32xf32>
    %71 = arith.mulf %58, %70 : vector<2x32xf32>
    %72 = arith.addf %67, %71 : vector<2x32xf32>
    %73 = math.tanh %72 : vector<2x32xf32>
    %cst_25 = arith.constant 1.000000e+00 : f32
    %74 = vector.broadcast %cst_25 : f32 to vector<2x32xf32>
    %75 = arith.subf %74, %66 : vector<2x32xf32>
    %76 = arith.mulf %75, %73 : vector<2x32xf32>
    %77 = arith.mulf %66, %40 : vector<2x32xf32>
    %78 = arith.addf %76, %77 : vector<2x32xf32>
    %c0_26 = arith.constant 0 : index
    %79 = arith.index_cast %46 : i32 to index
    %c0_27 = arith.constant 0 : index
    %c0_28 = arith.constant 0 : index
    %80 = vector.load %arg5[%c0_26, %79, %c0_27, %c0_28] : memref<1x8x2x32xf32, #tpu.memory_space<vmem>>, vector<1x1x2x32xf32>
    %81 = vector.shape_cast %80 : vector<1x1x2x32xf32> to vector<2x32xf32>
    %82 = vector.shape_cast %78 : vector<2x32xf32> to vector<1x1x2x32xf32>
    tpu.vector_store %arg5[%c0_26, %79, %c0_27, %c0_28], %82 {strides = array<i32>} : memref<1x8x2x32xf32, #tpu.memory_space<vmem>>, vector<1x1x2x32xf32>,
    %c2_i32 = arith.constant 2 : i32
    %c7_i32_29 = arith.constant 7 : i32
    %83 = arith.subi %c7_i32_29, %c2_i32 : i32
    %84 = arith.select %0, %83, %c2_i32 : i32
    %c0_30 = arith.constant 0 : index
    %85 = arith.index_cast %84 : i32 to index
    %c0_31 = arith.constant 0 : index
    %c0_32 = arith.constant 0 : index
    %86 = vector.load %arg1[%c0_30, %85, %c0_31, %c0_32] : memref<1x8x2x96xf32, #tpu.memory_space<vmem>>, vector<1x1x2x96xf32>
    %87 = vector.shape_cast %86 : vector<1x1x2x96xf32> to vector<2x96xf32>
    %cst_33 = arith.constant dense<0.000000e+00> : vector<2x96xf32>
    %88 = tpu.matmul %78, %2, %cst_33 {dimension_numbers = #tpu.dot_dimension_numbers<[1], [0], [0], [1], [0, 0, 1, 1], [], []>} : vector<2x32xf32>, vector<32x96xf32>, vector<2x96xf32> -> vector<2x96xf32>
    %89 = vector.extract_strided_slice %87 {offsets = [0, 0], sizes = [2, 32], strides = [1, 1]} : vector<2x96xf32> to vector<2x32xf32>
    %90 = vector.extract_strided_slice %88 {offsets = [0, 0], sizes = [2, 32], strides = [1, 1]} : vector<2x96xf32> to vector<2x32xf32>
    %91 = arith.addf %89, %90 : vector<2x32xf32>
    %92 = arith.negf %91 : vector<2x32xf32>
    %93 = math.exp %92 : vector<2x32xf32>
    %cst_34 = arith.constant 1.000000e+00 : f32
    %94 = vector.broadcast %cst_34 : f32 to vector<2x32xf32>
    %95 = arith.addf %94, %93 : vector<2x32xf32>
    %96 = arith.divf %94, %95 : vector<2x32xf32>
    %97 = vector.extract_strided_slice %87 {offsets = [0, 32], sizes = [2, 32], strides = [1, 1]} : vector<2x96xf32> to vector<2x32xf32>
    %98 = vector.extract_strided_slice %88 {offsets = [0, 32], sizes = [2, 32], strides = [1, 1]} : vector<2x96xf32> to vector<2x32xf32>
    %99 = arith.addf %97, %98 : vector<2x32xf32>
    %100 = arith.negf %99 : vector<2x32xf32>
    %101 = math.exp %100 : vector<2x32xf32>
    %cst_35 = arith.constant 1.000000e+00 : f32
    %102 = vector.broadcast %cst_35 : f32 to vector<2x32xf32>
    %103 = arith.addf %102, %101 : vector<2x32xf32>
    %104 = arith.divf %102, %103 : vector<2x32xf32>
    %105 = vector.extract_strided_slice %87 {offsets = [0, 64], sizes = [2, 32], strides = [1, 1]} : vector<2x96xf32> to vector<2x32xf32>
    %106 = vector.extract_strided_slice %88 {offsets = [0, 64], sizes = [2, 32], strides = [1, 1]} : vector<2x96xf32> to vector<2x32xf32>
    %107 = vector.broadcast %4 : vector<1x32xf32> to vector<2x32xf32>
    %108 = arith.addf %106, %107 : vector<2x32xf32>
    %109 = arith.mulf %96, %108 : vector<2x32xf32>
    %110 = arith.addf %105, %109 : vector<2x32xf32>
    %111 = math.tanh %110 : vector<2x32xf32>
    %cst_36 = arith.constant 1.000000e+00 : f32
    %112 = vector.broadcast %cst_36 : f32 to vector<2x32xf32>
    %113 = arith.subf %112, %104 : vector<2x32xf32>
    %114 = arith.mulf %113, %111 : vector<2x32xf32>
    %115 = arith.mulf %104, %78 : vector<2x32xf32>
    %116 = arith.addf %114, %115 : vector<2x32xf32>
    %c0_37 = arith.constant 0 : index
    %117 = arith.index_cast %84 : i32 to index
    %c0_38 = arith.constant 0 : index
    %c0_39 = arith.constant 0 : index
    %118 = vector.load %arg5[%c0_37, %117, %c0_38, %c0_39] : memref<1x8x2x32xf32, #tpu.memory_space<vmem>>, vector<1x1x2x32xf32>
    %119 = vector.shape_cast %118 : vector<1x1x2x32xf32> to vector<2x32xf32>
    %120 = vector.shape_cast %116 : vector<2x32xf32> to vector<1x1x2x32xf32>
    tpu.vector_store %arg5[%c0_37, %117, %c0_38, %c0_39], %120 {strides = array<i32>} : memref<1x8x2x32xf32, #tpu.memory_space<vmem>>, vector<1x1x2x32xf32>,
    %c3_i32 = arith.constant 3 : i32
    %c7_i32_40 = arith.constant 7 : i32
    %121 = arith.subi %c7_i32_40, %c3_i32 : i32
    %122 = arith.select %0, %121, %c3_i32 : i32
    %c0_41 = arith.constant 0 : index
    %123 = arith.index_cast %122 : i32 to index
    %c0_42 = arith.constant 0 : index
    %c0_43 = arith.constant 0 : index
    %124 = vector.load %arg1[%c0_41, %123, %c0_42, %c0_43] : memref<1x8x2x96xf32, #tpu.memory_space<vmem>>, vector<1x1x2x96xf32>
    %125 = vector.shape_cast %124 : vector<1x1x2x96xf32> to vector<2x96xf32>
    %cst_44 = arith.constant dense<0.000000e+00> : vector<2x96xf32>
    %126 = tpu.matmul %116, %2, %cst_44 {dimension_numbers = #tpu.dot_dimension_numbers<[1], [0], [0], [1], [0, 0, 1, 1], [], []>} : vector<2x32xf32>, vector<32x96xf32>, vector<2x96xf32> -> vector<2x96xf32>
    %127 = vector.extract_strided_slice %125 {offsets = [0, 0], sizes = [2, 32], strides = [1, 1]} : vector<2x96xf32> to vector<2x32xf32>
    %128 = vector.extract_strided_slice %126 {offsets = [0, 0], sizes = [2, 32], strides = [1, 1]} : vector<2x96xf32> to vector<2x32xf32>
    %129 = arith.addf %127, %128 : vector<2x32xf32>
    %130 = arith.negf %129 : vector<2x32xf32>
    %131 = math.exp %130 : vector<2x32xf32>
    %cst_45 = arith.constant 1.000000e+00 : f32
    %132 = vector.broadcast %cst_45 : f32 to vector<2x32xf32>
    %133 = arith.addf %132, %131 : vector<2x32xf32>
    %134 = arith.divf %132, %133 : vector<2x32xf32>
    %135 = vector.extract_strided_slice %125 {offsets = [0, 32], sizes = [2, 32], strides = [1, 1]} : vector<2x96xf32> to vector<2x32xf32>
    %136 = vector.extract_strided_slice %126 {offsets = [0, 32], sizes = [2, 32], strides = [1, 1]} : vector<2x96xf32> to vector<2x32xf32>
    %137 = arith.addf %135, %136 : vector<2x32xf32>
    %138 = arith.negf %137 : vector<2x32xf32>
    %139 = math.exp %138 : vector<2x32xf32>
    %cst_46 = arith.constant 1.000000e+00 : f32
    %140 = vector.broadcast %cst_46 : f32 to vector<2x32xf32>
    %141 = arith.addf %140, %139 : vector<2x32xf32>
    %142 = arith.divf %140, %141 : vector<2x32xf32>
    %143 = vector.extract_strided_slice %125 {offsets = [0, 64], sizes = [2, 32], strides = [1, 1]} : vector<2x96xf32> to vector<2x32xf32>
    %144 = vector.extract_strided_slice %126 {offsets = [0, 64], sizes = [2, 32], strides = [1, 1]} : vector<2x96xf32> to vector<2x32xf32>
    %145 = vector.broadcast %4 : vector<1x32xf32> to vector<2x32xf32>
    %146 = arith.addf %144, %145 : vector<2x32xf32>
    %147 = arith.mulf %134, %146 : vector<2x32xf32>
    %148 = arith.addf %143, %147 : vector<2x32xf32>
    %149 = math.tanh %148 : vector<2x32xf32>
    %cst_47 = arith.constant 1.000000e+00 : f32
    %150 = vector.broadcast %cst_47 : f32 to vector<2x32xf32>
    %151 = arith.subf %150, %142 : vector<2x32xf32>
    %152 = arith.mulf %151, %149 : vector<2x32xf32>
    %153 = arith.mulf %142, %116 : vector<2x32xf32>
    %154 = arith.addf %152, %153 : vector<2x32xf32>
    %c0_48 = arith.constant 0 : index
    %155 = arith.index_cast %122 : i32 to index
    %c0_49 = arith.constant 0 : index
    %c0_50 = arith.constant 0 : index
    %156 = vector.load %arg5[%c0_48, %155, %c0_49, %c0_50] : memref<1x8x2x32xf32, #tpu.memory_space<vmem>>, vector<1x1x2x32xf32>
    %157 = vector.shape_cast %156 : vector<1x1x2x32xf32> to vector<2x32xf32>
    %158 = vector.shape_cast %154 : vector<2x32xf32> to vector<1x1x2x32xf32>
    tpu.vector_store %arg5[%c0_48, %155, %c0_49, %c0_50], %158 {strides = array<i32>} : memref<1x8x2x32xf32, #tpu.memory_space<vmem>>, vector<1x1x2x32xf32>,
    %c4_i32 = arith.constant 4 : i32
    %c7_i32_51 = arith.constant 7 : i32
    %159 = arith.subi %c7_i32_51, %c4_i32 : i32
    %160 = arith.select %0, %159, %c4_i32 : i32
    %c0_52 = arith.constant 0 : index
    %161 = arith.index_cast %160 : i32 to index
    %c0_53 = arith.constant 0 : index
    %c0_54 = arith.constant 0 : index
    %162 = vector.load %arg1[%c0_52, %161, %c0_53, %c0_54] : memref<1x8x2x96xf32, #tpu.memory_space<vmem>>, vector<1x1x2x96xf32>
    %163 = vector.shape_cast %162 : vector<1x1x2x96xf32> to vector<2x96xf32>
    %cst_55 = arith.constant dense<0.000000e+00> : vector<2x96xf32>
    %164 = tpu.matmul %154, %2, %cst_55 {dimension_numbers = #tpu.dot_dimension_numbers<[1], [0], [0], [1], [0, 0, 1, 1], [], []>} : vector<2x32xf32>, vector<32x96xf32>, vector<2x96xf32> -> vector<2x96xf32>
    %165 = vector.extract_strided_slice %163 {offsets = [0, 0], sizes = [2, 32], strides = [1, 1]} : vector<2x96xf32> to vector<2x32xf32>
    %166 = vector.extract_strided_slice %164 {offsets = [0, 0], sizes = [2, 32], strides = [1, 1]} : vector<2x96xf32> to vector<2x32xf32>
    %167 = arith.addf %165, %166 : vector<2x32xf32>
    %168 = arith.negf %167 : vector<2x32xf32>
    %169 = math.exp %168 : vector<2x32xf32>
    %cst_56 = arith.constant 1.000000e+00 : f32
    %170 = vector.broadcast %cst_56 : f32 to vector<2x32xf32>
    %171 = arith.addf %170, %169 : vector<2x32xf32>
    %172 = arith.divf %170, %171 : vector<2x32xf32>
    %173 = vector.extract_strided_slice %163 {offsets = [0, 32], sizes = [2, 32], strides = [1, 1]} : vector<2x96xf32> to vector<2x32xf32>
    %174 = vector.extract_strided_slice %164 {offsets = [0, 32], sizes = [2, 32], strides = [1, 1]} : vector<2x96xf32> to vector<2x32xf32>
    %175 = arith.addf %173, %174 : vector<2x32xf32>
    %176 = arith.negf %175 : vector<2x32xf32>
    %177 = math.exp %176 : vector<2x32xf32>
    %cst_57 = arith.constant 1.000000e+00 : f32
    %178 = vector.broadcast %cst_57 : f32 to vector<2x32xf32>
    %179 = arith.addf %178, %177 : vector<2x32xf32>
    %180 = arith.divf %178, %179 : vector<2x32xf32>
    %181 = vector.extract_strided_slice %163 {offsets = [0, 64], sizes = [2, 32], strides = [1, 1]} : vector<2x96xf32> to vector<2x32xf32>
    %182 = vector.extract_strided_slice %164 {offsets = [0, 64], sizes = [2, 32], strides = [1, 1]} : vector<2x96xf32> to vector<2x32xf32>
    %183 = vector.broadcast %4 : vector<1x32xf32> to vector<2x32xf32>
    %184 = arith.addf %182, %183 : vector<2x32xf32>
    %185 = arith.mulf %172, %184 : vector<2x32xf32>
    %186 = arith.addf %181, %185 : vector<2x32xf32>
    %187 = math.tanh %186 : vector<2x32xf32>
    %cst_58 = arith.constant 1.000000e+00 : f32
    %188 = vector.broadcast %cst_58 : f32 to vector<2x32xf32>
    %189 = arith.subf %188, %180 : vector<2x32xf32>
    %190 = arith.mulf %189, %187 : vector<2x32xf32>
    %191 = arith.mulf %180, %154 : vector<2x32xf32>
    %192 = arith.addf %190, %191 : vector<2x32xf32>
    %c0_59 = arith.constant 0 : index
    %193 = arith.index_cast %160 : i32 to index
    %c0_60 = arith.constant 0 : index
    %c0_61 = arith.constant 0 : index
    %194 = vector.load %arg5[%c0_59, %193, %c0_60, %c0_61] : memref<1x8x2x32xf32, #tpu.memory_space<vmem>>, vector<1x1x2x32xf32>
    %195 = vector.shape_cast %194 : vector<1x1x2x32xf32> to vector<2x32xf32>
    %196 = vector.shape_cast %192 : vector<2x32xf32> to vector<1x1x2x32xf32>
    tpu.vector_store %arg5[%c0_59, %193, %c0_60, %c0_61], %196 {strides = array<i32>} : memref<1x8x2x32xf32, #tpu.memory_space<vmem>>, vector<1x1x2x32xf32>,
    %c5_i32 = arith.constant 5 : i32
    %c7_i32_62 = arith.constant 7 : i32
    %197 = arith.subi %c7_i32_62, %c5_i32 : i32
    %198 = arith.select %0, %197, %c5_i32 : i32
    %c0_63 = arith.constant 0 : index
    %199 = arith.index_cast %198 : i32 to index
    %c0_64 = arith.constant 0 : index
    %c0_65 = arith.constant 0 : index
    %200 = vector.load %arg1[%c0_63, %199, %c0_64, %c0_65] : memref<1x8x2x96xf32, #tpu.memory_space<vmem>>, vector<1x1x2x96xf32>
    %201 = vector.shape_cast %200 : vector<1x1x2x96xf32> to vector<2x96xf32>
    %cst_66 = arith.constant dense<0.000000e+00> : vector<2x96xf32>
    %202 = tpu.matmul %192, %2, %cst_66 {dimension_numbers = #tpu.dot_dimension_numbers<[1], [0], [0], [1], [0, 0, 1, 1], [], []>} : vector<2x32xf32>, vector<32x96xf32>, vector<2x96xf32> -> vector<2x96xf32>
    %203 = vector.extract_strided_slice %201 {offsets = [0, 0], sizes = [2, 32], strides = [1, 1]} : vector<2x96xf32> to vector<2x32xf32>
    %204 = vector.extract_strided_slice %202 {offsets = [0, 0], sizes = [2, 32], strides = [1, 1]} : vector<2x96xf32> to vector<2x32xf32>
    %205 = arith.addf %203, %204 : vector<2x32xf32>
    %206 = arith.negf %205 : vector<2x32xf32>
    %207 = math.exp %206 : vector<2x32xf32>
    %cst_67 = arith.constant 1.000000e+00 : f32
    %208 = vector.broadcast %cst_67 : f32 to vector<2x32xf32>
    %209 = arith.addf %208, %207 : vector<2x32xf32>
    %210 = arith.divf %208, %209 : vector<2x32xf32>
    %211 = vector.extract_strided_slice %201 {offsets = [0, 32], sizes = [2, 32], strides = [1, 1]} : vector<2x96xf32> to vector<2x32xf32>
    %212 = vector.extract_strided_slice %202 {offsets = [0, 32], sizes = [2, 32], strides = [1, 1]} : vector<2x96xf32> to vector<2x32xf32>
    %213 = arith.addf %211, %212 : vector<2x32xf32>
    %214 = arith.negf %213 : vector<2x32xf32>
    %215 = math.exp %214 : vector<2x32xf32>
    %cst_68 = arith.constant 1.000000e+00 : f32
    %216 = vector.broadcast %cst_68 : f32 to vector<2x32xf32>
    %217 = arith.addf %216, %215 : vector<2x32xf32>
    %218 = arith.divf %216, %217 : vector<2x32xf32>
    %219 = vector.extract_strided_slice %201 {offsets = [0, 64], sizes = [2, 32], strides = [1, 1]} : vector<2x96xf32> to vector<2x32xf32>
    %220 = vector.extract_strided_slice %202 {offsets = [0, 64], sizes = [2, 32], strides = [1, 1]} : vector<2x96xf32> to vector<2x32xf32>
    %221 = vector.broadcast %4 : vector<1x32xf32> to vector<2x32xf32>
    %222 = arith.addf %220, %221 : vector<2x32xf32>
    %223 = arith.mulf %210, %222 : vector<2x32xf32>
    %224 = arith.addf %219, %223 : vector<2x32xf32>
    %225 = math.tanh %224 : vector<2x32xf32>
    %cst_69 = arith.constant 1.000000e+00 : f32
    %226 = vector.broadcast %cst_69 : f32 to vector<2x32xf32>
    %227 = arith.subf %226, %218 : vector<2x32xf32>
    %228 = arith.mulf %227, %225 : vector<2x32xf32>
    %229 = arith.mulf %218, %192 : vector<2x32xf32>
    %230 = arith.addf %228, %229 : vector<2x32xf32>
    %c0_70 = arith.constant 0 : index
    %231 = arith.index_cast %198 : i32 to index
    %c0_71 = arith.constant 0 : index
    %c0_72 = arith.constant 0 : index
    %232 = vector.load %arg5[%c0_70, %231, %c0_71, %c0_72] : memref<1x8x2x32xf32, #tpu.memory_space<vmem>>, vector<1x1x2x32xf32>
    %233 = vector.shape_cast %232 : vector<1x1x2x32xf32> to vector<2x32xf32>
    %234 = vector.shape_cast %230 : vector<2x32xf32> to vector<1x1x2x32xf32>
    tpu.vector_store %arg5[%c0_70, %231, %c0_71, %c0_72], %234 {strides = array<i32>} : memref<1x8x2x32xf32, #tpu.memory_space<vmem>>, vector<1x1x2x32xf32>,
    %c6_i32 = arith.constant 6 : i32
    %c7_i32_73 = arith.constant 7 : i32
    %235 = arith.subi %c7_i32_73, %c6_i32 : i32
    %236 = arith.select %0, %235, %c6_i32 : i32
    %c0_74 = arith.constant 0 : index
    %237 = arith.index_cast %236 : i32 to index
    %c0_75 = arith.constant 0 : index
    %c0_76 = arith.constant 0 : index
    %238 = vector.load %arg1[%c0_74, %237, %c0_75, %c0_76] : memref<1x8x2x96xf32, #tpu.memory_space<vmem>>, vector<1x1x2x96xf32>
    %239 = vector.shape_cast %238 : vector<1x1x2x96xf32> to vector<2x96xf32>
    %cst_77 = arith.constant dense<0.000000e+00> : vector<2x96xf32>
    %240 = tpu.matmul %230, %2, %cst_77 {dimension_numbers = #tpu.dot_dimension_numbers<[1], [0], [0], [1], [0, 0, 1, 1], [], []>} : vector<2x32xf32>, vector<32x96xf32>, vector<2x96xf32> -> vector<2x96xf32>
    %241 = vector.extract_strided_slice %239 {offsets = [0, 0], sizes = [2, 32], strides = [1, 1]} : vector<2x96xf32> to vector<2x32xf32>
    %242 = vector.extract_strided_slice %240 {offsets = [0, 0], sizes = [2, 32], strides = [1, 1]} : vector<2x96xf32> to vector<2x32xf32>
    %243 = arith.addf %241, %242 : vector<2x32xf32>
    %244 = arith.negf %243 : vector<2x32xf32>
    %245 = math.exp %244 : vector<2x32xf32>
    %cst_78 = arith.constant 1.000000e+00 : f32
    %246 = vector.broadcast %cst_78 : f32 to vector<2x32xf32>
    %247 = arith.addf %246, %245 : vector<2x32xf32>
    %248 = arith.divf %246, %247 : vector<2x32xf32>
    %249 = vector.extract_strided_slice %239 {offsets = [0, 32], sizes = [2, 32], strides = [1, 1]} : vector<2x96xf32> to vector<2x32xf32>
    %250 = vector.extract_strided_slice %240 {offsets = [0, 32], sizes = [2, 32], strides = [1, 1]} : vector<2x96xf32> to vector<2x32xf32>
    %251 = arith.addf %249, %250 : vector<2x32xf32>
    %252 = arith.negf %251 : vector<2x32xf32>
    %253 = math.exp %252 : vector<2x32xf32>
    %cst_79 = arith.constant 1.000000e+00 : f32
    %254 = vector.broadcast %cst_79 : f32 to vector<2x32xf32>
    %255 = arith.addf %254, %253 : vector<2x32xf32>
    %256 = arith.divf %254, %255 : vector<2x32xf32>
    %257 = vector.extract_strided_slice %239 {offsets = [0, 64], sizes = [2, 32], strides = [1, 1]} : vector<2x96xf32> to vector<2x32xf32>
    %258 = vector.extract_strided_slice %240 {offsets = [0, 64], sizes = [2, 32], strides = [1, 1]} : vector<2x96xf32> to vector<2x32xf32>
    %259 = vector.broadcast %4 : vector<1x32xf32> to vector<2x32xf32>
    %260 = arith.addf %258, %259 : vector<2x32xf32>
    %261 = arith.mulf %248, %260 : vector<2x32xf32>
    %262 = arith.addf %257, %261 : vector<2x32xf32>
    %263 = math.tanh %262 : vector<2x32xf32>
    %cst_80 = arith.constant 1.000000e+00 : f32
    %264 = vector.broadcast %cst_80 : f32 to vector<2x32xf32>
    %265 = arith.subf %264, %256 : vector<2x32xf32>
    %266 = arith.mulf %265, %263 : vector<2x32xf32>
    %267 = arith.mulf %256, %230 : vector<2x32xf32>
    %268 = arith.addf %266, %267 : vector<2x32xf32>
    %c0_81 = arith.constant 0 : index
    %269 = arith.index_cast %236 : i32 to index
    %c0_82 = arith.constant 0 : index
    %c0_83 = arith.constant 0 : index
    %270 = vector.load %arg5[%c0_81, %269, %c0_82, %c0_83] : memref<1x8x2x32xf32, #tpu.memory_space<vmem>>, vector<1x1x2x32xf32>
    %271 = vector.shape_cast %270 : vector<1x1x2x32xf32> to vector<2x32xf32>
    %272 = vector.shape_cast %268 : vector<2x32xf32> to vector<1x1x2x32xf32>
    tpu.vector_store %arg5[%c0_81, %269, %c0_82, %c0_83], %272 {strides = array<i32>} : memref<1x8x2x32xf32, #tpu.memory_space<vmem>>, vector<1x1x2x32xf32>,
    %c7_i32_84 = arith.constant 7 : i32
    %c7_i32_85 = arith.constant 7 : i32
    %273 = arith.subi %c7_i32_85, %c7_i32_84 : i32
    %274 = arith.select %0, %273, %c7_i32_84 : i32
    %c0_86 = arith.constant 0 : index
    %275 = arith.index_cast %274 : i32 to index
    %c0_87 = arith.constant 0 : index
    %c0_88 = arith.constant 0 : index
    %276 = vector.load %arg1[%c0_86, %275, %c0_87, %c0_88] : memref<1x8x2x96xf32, #tpu.memory_space<vmem>>, vector<1x1x2x96xf32>
    %277 = vector.shape_cast %276 : vector<1x1x2x96xf32> to vector<2x96xf32>
    %cst_89 = arith.constant dense<0.000000e+00> : vector<2x96xf32>
    %278 = tpu.matmul %268, %2, %cst_89 {dimension_numbers = #tpu.dot_dimension_numbers<[1], [0], [0], [1], [0, 0, 1, 1], [], []>} : vector<2x32xf32>, vector<32x96xf32>, vector<2x96xf32> -> vector<2x96xf32>
    %279 = vector.extract_strided_slice %277 {offsets = [0, 0], sizes = [2, 32], strides = [1, 1]} : vector<2x96xf32> to vector<2x32xf32>
    %280 = vector.extract_strided_slice %278 {offsets = [0, 0], sizes = [2, 32], strides = [1, 1]} : vector<2x96xf32> to vector<2x32xf32>
    %281 = arith.addf %279, %280 : vector<2x32xf32>
    %282 = arith.negf %281 : vector<2x32xf32>
    %283 = math.exp %282 : vector<2x32xf32>
    %cst_90 = arith.constant 1.000000e+00 : f32
    %284 = vector.broadcast %cst_90 : f32 to vector<2x32xf32>
    %285 = arith.addf %284, %283 : vector<2x32xf32>
    %286 = arith.divf %284, %285 : vector<2x32xf32>
    %287 = vector.extract_strided_slice %277 {offsets = [0, 32], sizes = [2, 32], strides = [1, 1]} : vector<2x96xf32> to vector<2x32xf32>
    %288 = vector.extract_strided_slice %278 {offsets = [0, 32], sizes = [2, 32], strides = [1, 1]} : vector<2x96xf32> to vector<2x32xf32>
    %289 = arith.addf %287, %288 : vector<2x32xf32>
    %290 = arith.negf %289 : vector<2x32xf32>
    %291 = math.exp %290 : vector<2x32xf32>
    %cst_91 = arith.constant 1.000000e+00 : f32
    %292 = vector.broadcast %cst_91 : f32 to vector<2x32xf32>
    %293 = arith.addf %292, %291 : vector<2x32xf32>
    %294 = arith.divf %292, %293 : vector<2x32xf32>
    %295 = vector.extract_strided_slice %277 {offsets = [0, 64], sizes = [2, 32], strides = [1, 1]} : vector<2x96xf32> to vector<2x32xf32>
    %296 = vector.extract_strided_slice %278 {offsets = [0, 64], sizes = [2, 32], strides = [1, 1]} : vector<2x96xf32> to vector<2x32xf32>
    %297 = vector.broadcast %4 : vector<1x32xf32> to vector<2x32xf32>
    %298 = arith.addf %296, %297 : vector<2x32xf32>
    %299 = arith.mulf %286, %298 : vector<2x32xf32>
    %300 = arith.addf %295, %299 : vector<2x32xf32>
    %301 = math.tanh %300 : vector<2x32xf32>
    %cst_92 = arith.constant 1.000000e+00 : f32
    %302 = vector.broadcast %cst_92 : f32 to vector<2x32xf32>
    %303 = arith.subf %302, %294 : vector<2x32xf32>
    %304 = arith.mulf %303, %301 : vector<2x32xf32>
    %305 = arith.mulf %294, %268 : vector<2x32xf32>
    %306 = arith.addf %304, %305 : vector<2x32xf32>
    %c0_93 = arith.constant 0 : index
    %307 = arith.index_cast %274 : i32 to index
    %c0_94 = arith.constant 0 : index
    %c0_95 = arith.constant 0 : index
    %308 = vector.load %arg5[%c0_93, %307, %c0_94, %c0_95] : memref<1x8x2x32xf32, #tpu.memory_space<vmem>>, vector<1x1x2x32xf32>
    %309 = vector.shape_cast %308 : vector<1x1x2x32xf32> to vector<2x32xf32>
    %310 = vector.shape_cast %306 : vector<2x32xf32> to vector<1x1x2x32xf32>
    tpu.vector_store %arg5[%c0_93, %307, %c0_94, %c0_95], %310 {strides = array<i32>} : memref<1x8x2x32xf32, #tpu.memory_space<vmem>>, vector<1x1x2x32xf32>,
    %c8_i32 = arith.constant 8 : i32
    %c0_96 = arith.constant 0 : index
    %c0_97 = arith.constant 0 : index
    %c0_98 = arith.constant 0 : index
    %311 = vector.load %arg6[%c0_96, %c0_97, %c0_98] : memref<1x2x32xf32, #tpu.memory_space<vmem>>, vector<1x2x32xf32>
    %312 = vector.shape_cast %311 : vector<1x2x32xf32> to vector<2x32xf32>
    %313 = vector.shape_cast %306 : vector<2x32xf32> to vector<1x2x32xf32>
    tpu.vector_store %arg6[%c0_96, %c0_97, %c0_98], %313 {strides = array<i32>} : memref<1x2x32xf32, #tpu.memory_space<vmem>>, vector<1x2x32xf32>,
    return
  }
  func.func @transform_0(%arg0: i32) -> (i32, i32, i32, i32) {
    %c0_i32 = arith.constant 0 : i32
    %c0_i32_0 = arith.constant 0 : i32
    %c0_i32_1 = arith.constant 0 : i32
    %c0_i32_2 = arith.constant 0 : i32
    return %arg0, %c0_i32, %c0_i32_0, %c0_i32_1 : i32, i32, i32, i32
  }
  func.func @transform_1(%arg0: i32) -> (i32, i32, i32) {
    %c0_i32 = arith.constant 0 : i32
    %c0_i32_0 = arith.constant 0 : i32
    %c0_i32_1 = arith.constant 0 : i32
    return %arg0, %c0_i32, %c0_i32_0 : i32, i32, i32
  }
  func.func @transform_2(%arg0: i32) -> (i32, i32, i32) {
    %c0_i32 = arith.constant 0 : i32
    %c0_i32_0 = arith.constant 0 : i32
    %c0_i32_1 = arith.constant 0 : i32
    return %arg0, %c0_i32, %c0_i32_0 : i32, i32, i32
  }
  func.func @transform_3(%arg0: i32) -> (i32, i32, i32) {
    %c0_i32 = arith.constant 0 : i32
    %c0_i32_0 = arith.constant 0 : i32
    %c0_i32_1 = arith.constant 0 : i32
    return %arg0, %c0_i32, %c0_i32_0 : i32, i32, i32
  }
  func.func @transform_4(%arg0: i32) -> (i32, i32, i32, i32) {
    %c0_i32 = arith.constant 0 : i32
    %c0_i32_0 = arith.constant 0 : i32
    %c0_i32_1 = arith.constant 0 : i32
    %c0_i32_2 = arith.constant 0 : i32
    return %arg0, %c0_i32, %c0_i32_0, %c0_i32_1 : i32, i32, i32, i32
  }
  func.func @transform_5(%arg0: i32) -> (i32, i32, i32) {
    %c0_i32 = arith.constant 0 : i32
    %c0_i32_0 = arith.constant 0 : i32
    %c0_i32_1 = arith.constant 0 : i32
    return %arg0, %c0_i32, %c0_i32_0 : i32, i32, i32
  }
}

</mosaic_0001>

<bundles_post_ra>
// kernel: encoder_gru_forward.2
= control target key start
LH: loop header
LB: loop body
LE: loop exit
PB: predicated region body
PF: predicated region fallthrough
CT: control target
= control target key end

     0   :  { %s1607_s18 = smov 0   ;;  %s1838_s0 = inlined_call_operand.vmem [shape: f32[2,8,2,96], index: 0, kind: input, shape index: {}]   ;;  %s1839_s1 = inlined_call_operand.vmem [shape: f32[2,2,32], index: 1, kind: input, shape index: {}]   ;;  %s1840_s2 = inlined_call_operand.vmem [shape: f32[2,32,96], index: 2, kind: input, shape index: {}]   ;;  %s1841_s3 = inlined_call_operand.vmem [shape: f32[2,1,32], index: 3, kind: input, shape index: {}]   ;;  %s1842_s4 = inlined_call_operand.vmem [shape: f32[2,8,2,32], index: 4, kind: output, shape index: {0}]   ;;  %s1843_s5 = inlined_call_operand.vmem [shape: f32[2,2,32], index: 5, kind: output, shape index: {1}]  }
   0x1 LB: > { %s1613_s19 = sadd.s32 4294967295, %s1570_s18   ;;  %p1336_p0 = scmp.ge.s32.totalorder %s1570_s18, 1  ;;  %s1570_s18 = sphi %s1607_s18, %s16_s18  }
   0x2   : > { %p217_p1 = scmp.lt.s32.totalorder %s1570_s18, 3 }
   0x4   : > { %p218_p2 = pnand %p1336_p0, %p217_p1 }
   0x5   : > { %p261_p3 = scmp.lt.s32.totalorder (!%p218_p2), %s1613_s19, 1  ;;  %s1574_s7 = smov (!%p218_p2), 64  }
   0x6   : > { %221 = sbr.rel (%p218_p2) target bundleno = 5440 (0x1540), region = 36  ;;  %s1575_s8 = smov (!%p218_p2), 32  }
   0x7   : > { %p287_p4 = scmp.eq.s32.totalorder (!%p218_p2), %s1613_s19, 1  ;;  %s1576_s16 = smov (!%p218_p2), 96  }
   0xb   : > { %v1572_v0 = vmov 0.0   ;;  %vm1573_vm0 = vmmov 0   ;;  %s1622_s20 = scalar_select %p261_p3, %s1613_s19, 1  ;;  %vm298_vm1 = vcmask 261120   ;;  %vm415_vm2 = vcmask 254976  }
   0xc   : > { %1415 = vmatprep.subr.mxu0 %v1572_v0  ;;  %1423 = vmatprep.mubr.msk.f32.mxu0 %vm1573_vm0, %v1572_v0  ;;  %s1684_s9 = scalar_select %p287_p4, 7, 0 }
   0xd   : > { %1426 = vmatprep.subr.mxu1 %v1572_v0  ;;  %1434 = vmatprep.mubr.msk.f32.mxu1 %vm1573_vm0, %v1572_v0  ;;  %s1373_s21 = sshll.u32 %s1622_s20, 5  ;;  %s1339_s25 = sshll.u32 %s1622_s20, 1 }
   0xe   : > { %s274_s24 = scalar_lea.vmem %s1840_s2, %s1373_s21  ;;  %s277_s28 = scalar_lea.vmem %s1841_s3, %s1622_s20 }
   0xf   : > { %v1632_v1 = vld [vmem:[%s274_s24 + $0x18] sm:$0xff]  ;;  %v1634_v2 = vld [vmem:[%s274_s24 + $0x10] sm:$0xff]  ;;  %v1348_v3 = vld [vmem:[%s277_s28] ss:$0 sm:$0xff]  ;;  %s269_s6 = scalar_lea.vmem %s1839_s1, %s1339_s25  ;;  %s1372_s10 = sshll.u32 %s1622_s20, 4 }
  0x10   : > { %1416 = vmatpush3.msra.mxu0 %v1632_v1  ;;  %1427 = vmatpush3.msra.mxu1 %v1632_v1  ;;  %v1643_v4 = vld [vmem:[%s274_s24 + $0x8] sm:$0xff]  ;;  %v1654_v5 = vld [vmem:[%s274_s24] sm:$0xff]  ;;  %s1690_s13 = scalar_lea.vmem %s1838_s0, %s1372_s10  ;;  %s1345_s14 = sshll.u32 %s1684_s9, 1 }
  0x11   : > { %1417 = vmatprep.subr.mxu0 %v1572_v0  ;;  %384 = vrot.lane.b32.xlu0 %v1348_v3, %s1574_s7  ;;  %v293_v6 = vld [vmem:[%s269_s6] sm:$0x3]  ;;  %s296_s15 = scalar_lea.vmem %s1690_s13, %s1345_s14  ;;  %s1700_s22 = scalar_lea.vmem %s1842_s4, %s1372_s10 }
  0x12   : > { %1418 = vmatpush3.msra.mxu0 %v1634_v2  ;;  %1428 = vmatprep.subr.mxu1 %v1572_v0  ;;  %v297_v11 = vld [vmem:[%s296_s15] sm:$0x3]  ;;  %s414_s23 = scalar_lea.vmem %s1700_s22, %s1345_s14 }
  0x13   : > { %1419 = vmatprep.subr.mxu0 %v1572_v0  ;;  %1429 = vmatpush3.msra.mxu1 %v1634_v2  ;;  %s417_s24 = scalar_select %p287_p4, 6, 1 }
  0x14   : > { %1420 = vmatpush3.msra.mxu0 %v1643_v4  ;;  %1430 = vmatprep.subr.mxu1 %v1572_v0  ;;  %s526_s29 = scalar_select %p287_p4, 5, 2 }
  0x15   : > { %1421 = vmatprep.subr.mxu0 %v1572_v0  ;;  %1431 = vmatpush3.msra.mxu1 %v1643_v4  ;;  %s1349_s26 = sshll.u32 %s417_s24, 1 }
  0x16   : > { %1422 = vmatpush3.msra.mxu0 %v1654_v5  ;;  %1432 = vmatprep.subr.mxu1 %v1572_v0  ;;  %s419_s27 = scalar_lea.vmem %s1690_s13, %s1349_s26  ;;  %s524_s28 = scalar_lea.vmem %s1700_s22, %s1349_s26 }
  0x17   : > { %1424 = vmatmul.mubr.msk.f32.vlgmr.msra.gmra.mxu0 %vm298_vm1, %v293_v6  ;;  %1433 = vmatpush3.msra.mxu1 %v1654_v5  ;;  %v420_v32 = vld [vmem:[%s419_s27] sm:$0x3]  ;;  %s1352_s30 = sshll.u32 %s526_s29, 1 }
  0x18   : > { %1437 = vmatprep.subr.mxu0 %v1572_v0  ;;  %1445 = vmatprep.mubr.msk.f32.mxu0 %vm1573_vm0, %v1572_v0  ;;  %s528_s6 = scalar_lea.vmem %s1690_s13, %s1352_s30 }
  0x19   : > { %1438 = vmatpush3.msra.mxu0 %v1632_v1  ;;  %1448 = vmatprep.subr.mxu1 %v1572_v0  ;;  %v529_v52 = vld [vmem:[%s528_s6] sm:$0x3]  ;;  %s635_s9 = scalar_select %p287_p4, 4, 3 }
  0x1a   : > { %1439 = vmatprep.subr.mxu0 %v1572_v0  ;;  %s744_s14 = scalar_select %p287_p4, 3, 4 }
  0x1b   : > { %1440 = vmatpush3.msra.mxu0 %v1634_v2  ;;  %s1355_s10 = sshll.u32 %s635_s9, 1 }
  0x1c   : > { %1441 = vmatprep.subr.mxu0 %v1572_v0  ;;  %s637_s11 = scalar_lea.vmem %s1690_s13, %s1355_s10  ;;  %s742_s12 = scalar_lea.vmem %s1700_s22, %s1355_s10 }
  0x1d   : > { %1442 = vmatpush3.msra.mxu0 %v1643_v4  ;;  %s1358_s15 = sshll.u32 %s744_s14, 1 }
  0x1e   : > { %1443 = vmatprep.subr.mxu0 %v1572_v0  ;;  %s746_s17 = scalar_lea.vmem %s1690_s13, %s1358_s15  ;;  %s851_s21 = scalar_lea.vmem %s1700_s22, %s1358_s15 }
  0x1f   : > { %1444 = vmatpush3.msra.mxu0 %v1654_v5 }
  0x20   : > { %1459 = vmatprep.subr.mxu0 %v1572_v0 }
  0x83   : > { %v1677_v7 = vpop.permute.xlu0 %384 }
  0xd7   : > { %v368_v8 = vpop.f32.mrf.mxu0 }
  0xd8   : > { %v387_v9 = vadd.f32 %v1677_v7, %v368_v8  ;;  %v372_v12 = vadd.f32 %v368_v8, %v297_v11 }
  0xd9   : > { %v1425_v10 = vpop.f32.mrf.mxu0 }
  0xda   : > { %389 = vrot.lane.b32.xlu0 %v387_v9, %s1574_s7  ;;  %v1347_v13 = vmul.f32 -1.442695, %v372_v12 }
  0xdc   : > { %1516 = vpow2.f32 %v1347_v13 }
  0xde   : > { %405 = vrot.lane.b32.xlu0 %v293_v6, %s1575_s8  ;;  %s633_s8 = scalar_lea.vmem %s1700_s22, %s1352_s30 }
  0xe9   : > { %v1517_v14 = vpop.eup %1516 }
  0xea   : > { %v376_v15 = vadd.f32 1.0, %v1517_v14  ;;  %v638_v14 = vld [vmem:[%s637_s11] sm:$0x3] }
  0xec   : > { %1518 = vrcp.f32 %v376_v15 }
  0xf9   : > { %v1519_v16 = vpop.eup %1518 }
  0xfa   : > { %v399_v23 = vsub.f32 1.0, %v1519_v16 }
 0x14c   : > { %v390_v17 = vpop.permute.xlu0 %389 }
 0x14d   : > { %v392_v18 = vmul.f32 %v1519_v16, %v390_v17 }
 0x14f   : > { %394 = vrot.lane.b32.xlu1 %v392_v18, %s1574_s7 }
 0x150   : > { %v406_v22 = vpop.permute.xlu0 %405 }
 0x151   : > { %v408_v25 = vmul.f32 %v1519_v16, %v406_v22 }
 0x1c1   : > { %v395_v19 = vpop.permute.xlu1 %394 }
 0x1c2   : > { %v397_v20 = vadd.f32 %v395_v19, %v297_v11 }
 0x1c4   : > { %1520 = vtanh.f32 %v397_v20 }
 0x1d1   : > { %v1521_v21 = vpop.eup %1520 }
 0x1d2   : > { %401 = vrot.lane.b32.xlu1 %v1521_v21, %s1576_s16 }
 0x244   : > { %v402_v24 = vpop.permute.xlu1 %401 }
 0x245   : > { %v404_v26 = vmul.f32 %v402_v24, %v399_v23 }
 0x247   : > { %v409_v27 = vadd.f32 %v408_v25, %v404_v26 }
 0x249   : > { %411 = vrot.lane.b32.xlu1 %v409_v27, %s1576_s16 }
 0x2bb   : > { %v412_v28 = vpop.permute.xlu1 %411 }
 0x2bc   : > { %416 = vst.msk [vmem:[%s414_s23] sm:$0x3] %vm415_vm2, %v412_v28  ;;  %1435 = vmatmul.mubr.msk.f32.vlgmr.msra.gmra.mxu1 %vm298_vm1, %v412_v28  ;;  %s853_s23 = scalar_select %p287_p4, 2, 5 }
 0x2bd   : > { %1449 = vmatpush3.msra.mxu1 %v1632_v1  ;;  %1456 = vmatprep.mubr.msk.f32.mxu1 %vm1573_vm0, %v1572_v0 }
 0x2be   : > { %1450 = vmatprep.subr.mxu1 %v1572_v0  ;;  %s1361_s24 = sshll.u32 %s853_s23, 1 }
 0x2bf   : > { %1451 = vmatpush3.msra.mxu1 %v1634_v2  ;;  %s855_s26 = scalar_lea.vmem %s1690_s13, %s1361_s24  ;;  %s960_s27 = scalar_lea.vmem %s1700_s22, %s1361_s24 }
 0x2c0   : > { %1452 = vmatprep.subr.mxu1 %v1572_v0 }
 0x2c1   : > { %1453 = vmatpush3.msra.mxu1 %v1643_v4 }
 0x2c2   : > { %1454 = vmatprep.subr.mxu1 %v1572_v0 }
 0x2c3   : > { %1455 = vmatpush3.msra.mxu1 %v1654_v5 }
 0x2c4   : > { %1470 = vmatprep.subr.mxu1 %v1572_v0 }
 0x37c   : > { %v489_v29 = vpop.f32.mrf.mxu1 }
 0x37d   : > { %v500_v30 = vadd.f32 %v489_v29, %v1677_v7  ;;  %v493_v33 = vadd.f32 %v489_v29, %v420_v32 }
 0x37e   : > { %v1436_v31 = vpop.f32.mrf.mxu1 }
 0x37f   : > { %502 = vrot.lane.b32.xlu0 %v500_v30, %s1574_s7  ;;  %v1351_v34 = vmul.f32 -1.442695, %v493_v33 }
 0x381   : > { %1522 = vpow2.f32 %v1351_v34  ;;  %v747_v34 = vld [vmem:[%s746_s17] sm:$0x3] }
 0x38e   : > { %v1523_v35 = vpop.eup %1522 }
 0x38f   : > { %v497_v36 = vadd.f32 1.0, %v1523_v35 }
 0x391   : > { %1524 = vrcp.f32 %v497_v36 }
 0x39e   : > { %v1525_v37 = vpop.eup %1524 }
 0x39f   : > { %v512_v43 = vsub.f32 1.0, %v1525_v37  ;;  %v518_v45 = vmul.f32 %v1525_v37, %v409_v27 }
 0x3f1   : > { %v503_v38 = vpop.permute.xlu0 %502 }
 0x3f2   : > { %v505_v39 = vmul.f32 %v1525_v37, %v503_v38 }
 0x3f4   : > { %507 = vrot.lane.b32.xlu1 %v505_v39, %s1574_s7 }
 0x466   : > { %v508_v40 = vpop.permute.xlu1 %507 }
 0x467   : > { %v510_v41 = vadd.f32 %v508_v40, %v420_v32 }
 0x469   : > { %1526 = vtanh.f32 %v510_v41 }
 0x476   : > { %v1527_v42 = vpop.eup %1526 }
 0x477   : > { %514 = vrot.lane.b32.xlu0 %v1527_v42, %s1576_s16 }
 0x4e9   : > { %v515_v44 = vpop.permute.xlu0 %514 }
 0x4ea   : > { %v517_v46 = vmul.f32 %v515_v44, %v512_v43 }
 0x4ec   : > { %v519_v47 = vadd.f32 %v518_v45, %v517_v46 }
 0x4ee   : > { %521 = vrot.lane.b32.xlu1 %v519_v47, %s1576_s16 }
 0x560   : > { %v522_v48 = vpop.permute.xlu1 %521 }
 0x561   : > { %525 = vst.msk [vmem:[%s524_s28] sm:$0x3] %vm415_vm2, %v522_v48  ;;  %1446 = vmatmul.mubr.msk.f32.vlgmr.msra.gmra.mxu0 %vm298_vm1, %v522_v48  ;;  %s962_s28 = scalar_select %p287_p4, 1, 6 }
 0x562   : > { %1460 = vmatpush3.msra.mxu0 %v1632_v1  ;;  %1467 = vmatprep.mubr.msk.f32.mxu0 %vm1573_vm0, %v1572_v0 }
 0x563   : > { %1461 = vmatprep.subr.mxu0 %v1572_v0  ;;  %s1364_s29 = sshll.u32 %s962_s28, 1 }
 0x564   : > { %1462 = vmatpush3.msra.mxu0 %v1634_v2  ;;  %s964_s30 = scalar_lea.vmem %s1690_s13, %s1364_s29  ;;  %s1069_s6 = scalar_lea.vmem %s1700_s22, %s1364_s29 }
 0x565   : > { %1463 = vmatprep.subr.mxu0 %v1572_v0 }
 0x566   : > { %1464 = vmatpush3.msra.mxu0 %v1643_v4 }
 0x567   : > { %1465 = vmatprep.subr.mxu0 %v1572_v0 }
 0x568   : > { %1466 = vmatpush3.msra.mxu0 %v1654_v5 }
 0x569   : > { %1481 = vmatprep.subr.mxu0 %v1572_v0 }
 0x621   : > { %v598_v49 = vpop.f32.mrf.mxu0 }
 0x622   : > { %v609_v50 = vadd.f32 %v598_v49, %v1677_v7  ;;  %v602_v53 = vadd.f32 %v598_v49, %v529_v52 }
 0x623   : > { %v1447_v51 = vpop.f32.mrf.mxu0 }
 0x624   : > { %611 = vrot.lane.b32.xlu0 %v609_v50, %s1574_s7  ;;  %v1354_v54 = vmul.f32 -1.442695, %v602_v53 }
 0x626   : > { %1528 = vpow2.f32 %v1354_v54 }
 0x633   : > { %v1529_v55 = vpop.eup %1528 }
 0x634   : > { %v606_v56 = vadd.f32 1.0, %v1529_v55 }
 0x636   : > { %1530 = vrcp.f32 %v606_v56 }
 0x643   : > { %v1531_v57 = vpop.eup %1530 }
 0x644   : > { %v621_v63 = vsub.f32 1.0, %v1531_v57  ;;  %v627_v6 = vmul.f32 %v1531_v57, %v519_v47 }
 0x696   : > { %v612_v58 = vpop.permute.xlu0 %611 }
 0x697   : > { %v614_v59 = vmul.f32 %v1531_v57, %v612_v58 }
 0x699   : > { %616 = vrot.lane.b32.xlu1 %v614_v59, %s1574_s7 }
 0x70b   : > { %v617_v60 = vpop.permute.xlu1 %616 }
 0x70c   : > { %v619_v61 = vadd.f32 %v617_v60, %v529_v52 }
 0x70e   : > { %1532 = vtanh.f32 %v619_v61 }
 0x71b   : > { %v1533_v62 = vpop.eup %1532 }
 0x71c   : > { %623 = vrot.lane.b32.xlu0 %v1533_v62, %s1576_s16 }
 0x78e   : > { %v624_v3 = vpop.permute.xlu0 %623 }
 0x78f   : > { %v626_v8 = vmul.f32 %v624_v3, %v621_v63 }
 0x791   : > { %v628_v9 = vadd.f32 %v627_v6, %v626_v8 }
 0x793   : > { %630 = vrot.lane.b32.xlu1 %v628_v9, %s1576_s16 }
 0x805   : > { %v631_v10 = vpop.permute.xlu1 %630 }
 0x806   : > { %634 = vst.msk [vmem:[%s633_s8] sm:$0x3] %vm415_vm2, %v631_v10  ;;  %1457 = vmatmul.mubr.msk.f32.vlgmr.msra.gmra.mxu1 %vm298_vm1, %v631_v10  ;;  %s1071_s8 = scalar_select %p287_p4, 0, 7 }
 0x807   : > { %1471 = vmatpush3.msra.mxu1 %v1632_v1  ;;  %1478 = vmatprep.mubr.msk.f32.mxu1 %vm1573_vm0, %v1572_v0 }
 0x808   : > { %1472 = vmatprep.subr.mxu1 %v1572_v0  ;;  %s1367_s9 = sshll.u32 %s1071_s8, 1 }
 0x809   : > { %1473 = vmatpush3.msra.mxu1 %v1634_v2  ;;  %s1073_s10 = scalar_lea.vmem %s1690_s13, %s1367_s9  ;;  %s1178_s19 = scalar_lea.vmem %s1700_s22, %s1367_s9 }
 0x80a   : > { %1474 = vmatprep.subr.mxu1 %v1572_v0 }
 0x80b   : > { %1475 = vmatpush3.msra.mxu1 %v1643_v4 }
 0x80c   : > { %1476 = vmatprep.subr.mxu1 %v1572_v0 }
 0x80d   : > { %1477 = vmatpush3.msra.mxu1 %v1654_v5 }
 0x80e   : > { %1492 = vmatprep.subr.mxu1 %v1572_v0 }
 0x8c6   : > { %v707_v11 = vpop.f32.mrf.mxu1 }
 0x8c7   : > { %v718_v12 = vadd.f32 %v707_v11, %v1677_v7  ;;  %v711_v15 = vadd.f32 %v707_v11, %v638_v14  ;;  %v965_v11 = vld [vmem:[%s964_s30] sm:$0x3] }
 0x8c8   : > { %v1458_v13 = vpop.f32.mrf.mxu1 }
 0x8c9   : > { %720 = vrot.lane.b32.xlu0 %v718_v12, %s1574_s7  ;;  %v1357_v16 = vmul.f32 -1.442695, %v711_v15 }
 0x8cb   : > { %1534 = vpow2.f32 %v1357_v16 }
 0x8d8   : > { %v1535_v17 = vpop.eup %1534 }
 0x8d9   : > { %v715_v18 = vadd.f32 1.0, %v1535_v17 }
 0x8db   : > { %1536 = vrcp.f32 %v715_v18 }
 0x8e8   : > { %v1537_v19 = vpop.eup %1536 }
 0x8e9   : > { %v730_v25 = vsub.f32 1.0, %v1537_v19  ;;  %v736_v27 = vmul.f32 %v1537_v19, %v628_v9 }
 0x93b   : > { %v721_v20 = vpop.permute.xlu0 %720 }
 0x93c   : > { %v723_v21 = vmul.f32 %v1537_v19, %v721_v20 }
 0x93e   : > { %725 = vrot.lane.b32.xlu1 %v723_v21, %s1574_s7 }
 0x9b0   : > { %v726_v22 = vpop.permute.xlu1 %725 }
 0x9b1   : > { %v728_v23 = vadd.f32 %v726_v22, %v638_v14 }
 0x9b3   : > { %1538 = vtanh.f32 %v728_v23 }
 0x9c0   : > { %v1539_v24 = vpop.eup %1538 }
 0x9c1   : > { %732 = vrot.lane.b32.xlu0 %v1539_v24, %s1576_s16 }
 0xa33   : > { %v733_v26 = vpop.permute.xlu0 %732 }
 0xa34   : > { %v735_v28 = vmul.f32 %v733_v26, %v730_v25 }
 0xa36   : > { %v737_v29 = vadd.f32 %v736_v27, %v735_v28 }
 0xa38   : > { %739 = vrot.lane.b32.xlu1 %v737_v29, %s1576_s16 }
 0xaaa   : > { %v740_v30 = vpop.permute.xlu1 %739 }
 0xaab   : > { %743 = vst.msk [vmem:[%s742_s12] sm:$0x3] %vm415_vm2, %v740_v30  ;;  %1468 = vmatmul.mubr.msk.f32.vlgmr.msra.gmra.mxu0 %vm298_vm1, %v740_v30  ;;  %s286_s12 = scalar_lea.vmem %s1843_s5, %s1339_s25 }
 0xaac   : > { %1482 = vmatpush3.msra.mxu0 %v1632_v1  ;;  %1489 = vmatprep.mubr.msk.f32.mxu0 %vm1573_vm0, %v1572_v0 }
 0xaad   : > { %1483 = vmatprep.subr.mxu0 %v1572_v0 }
 0xaae   : > { %1484 = vmatpush3.msra.mxu0 %v1634_v2 }
 0xaaf   : > { %1485 = vmatprep.subr.mxu0 %v1572_v0 }
 0xab0   : > { %1486 = vmatpush3.msra.mxu0 %v1643_v4 }
 0xab1   : > { %1487 = vmatprep.subr.mxu0 %v1572_v0 }
 0xab2   : > { %1488 = vmatpush3.msra.mxu0 %v1654_v5 }
 0xb6b   : > { %v816_v31 = vpop.f32.mrf.mxu0 }
 0xb6c   : > { %v827_v32 = vadd.f32 %v816_v31, %v1677_v7  ;;  %v820_v35 = vadd.f32 %v816_v31, %v747_v34  ;;  %v1074_v31 = vld [vmem:[%s1073_s10] sm:$0x3] }
 0xb6d   : > { %v1469_v33 = vpop.f32.mrf.mxu0 }
 0xb6e   : > { %829 = vrot.lane.b32.xlu0 %v827_v32, %s1574_s7  ;;  %v1360_v36 = vmul.f32 -1.442695, %v820_v35 }
 0xb70   : > { %1540 = vpow2.f32 %v1360_v36 }
 0xb7d   : > { %v1541_v37 = vpop.eup %1540 }
 0xb7e   : > { %v824_v38 = vadd.f32 1.0, %v1541_v37 }
 0xb80   : > { %1542 = vrcp.f32 %v824_v38 }
 0xb8d   : > { %v1543_v39 = vpop.eup %1542 }
 0xb8e   : > { %v839_v45 = vsub.f32 1.0, %v1543_v39  ;;  %v845_v47 = vmul.f32 %v1543_v39, %v737_v29 }
 0xbe0   : > { %v830_v40 = vpop.permute.xlu0 %829 }
 0xbe1   : > { %v832_v41 = vmul.f32 %v1543_v39, %v830_v40 }
 0xbe3   : > { %834 = vrot.lane.b32.xlu1 %v832_v41, %s1574_s7 }
 0xc55   : > { %v835_v42 = vpop.permute.xlu1 %834 }
 0xc56   : > { %v837_v43 = vadd.f32 %v835_v42, %v747_v34 }
 0xc58   : > { %1544 = vtanh.f32 %v837_v43 }
 0xc65   : > { %v1545_v44 = vpop.eup %1544 }
 0xc66   : > { %841 = vrot.lane.b32.xlu0 %v1545_v44, %s1576_s16 }
 0xcd8   : > { %v842_v46 = vpop.permute.xlu0 %841 }
 0xcd9   : > { %v844_v48 = vmul.f32 %v842_v46, %v839_v45 }
 0xcdb   : > { %v846_v49 = vadd.f32 %v845_v47, %v844_v48 }
 0xcdd   : > { %848 = vrot.lane.b32.xlu1 %v846_v49, %s1576_s16 }
 0xd4f   : > { %v849_v50 = vpop.permute.xlu1 %848 }
 0xd50   : > { %852 = vst.msk [vmem:[%s851_s21] sm:$0x3] %vm415_vm2, %v849_v50  ;;  %1479 = vmatmul.mubr.msk.f32.vlgmr.msra.gmra.mxu1 %vm298_vm1, %v849_v50 }
 0xd51   : > { %1493 = vmatpush3.msra.mxu1 %v1632_v1  ;;  %1500 = vmatprep.mubr.msk.f32.mxu1 %vm1573_vm0, %v1572_v0  ;;  %v856_v1 = vld [vmem:[%s855_s26] sm:$0x3] }
 0xd52   : > { %1494 = vmatprep.subr.mxu1 %v1572_v0 }
 0xd53   : > { %1495 = vmatpush3.msra.mxu1 %v1634_v2 }
 0xd54   : > { %1496 = vmatprep.subr.mxu1 %v1572_v0 }
 0xd55   : > { %1497 = vmatpush3.msra.mxu1 %v1643_v4 }
 0xd56   : > { %1498 = vmatprep.subr.mxu1 %v1572_v0 }
 0xd57   : > { %1499 = vmatpush3.msra.mxu1 %v1654_v5 }
 0xe10   : > { %v925_v51 = vpop.f32.mrf.mxu1 }
 0xe11   : > { %v936_v52 = vadd.f32 %v925_v51, %v1677_v7  ;;  %v929_v2 = vadd.f32 %v925_v51, %v856_v1 }
 0xe12   : > { %v1480_v53 = vpop.f32.mrf.mxu1 }
 0xe13   : > { %938 = vrot.lane.b32.xlu0 %v936_v52, %s1574_s7  ;;  %v1363_v54 = vmul.f32 -1.442695, %v929_v2 }
 0xe15   : > { %1546 = vpow2.f32 %v1363_v54 }
 0xe22   : > { %v1547_v55 = vpop.eup %1546 }
 0xe23   : > { %v933_v4 = vadd.f32 1.0, %v1547_v55 }
 0xe25   : > { %1548 = vrcp.f32 %v933_v4 }
 0xe32   : > { %v1549_v0 = vpop.eup %1548 }
 0xe33   : > { %v948_v60 = vsub.f32 1.0, %v1549_v0  ;;  %v954_v62 = vmul.f32 %v1549_v0, %v846_v49 }
 0xe85   : > { %v939_v5 = vpop.permute.xlu0 %938 }
 0xe86   : > { %v941_v56 = vmul.f32 %v1549_v0, %v939_v5 }
 0xe88   : > { %943 = vrot.lane.b32.xlu1 %v941_v56, %s1574_s7 }
 0xefa   : > { %v944_v57 = vpop.permute.xlu1 %943 }
 0xefb   : > { %v946_v58 = vadd.f32 %v944_v57, %v856_v1 }
 0xefd   : > { %1550 = vtanh.f32 %v946_v58 }
 0xf0a   : > { %v1551_v59 = vpop.eup %1550 }
 0xf0b   : > { %950 = vrot.lane.b32.xlu0 %v1551_v59, %s1576_s16 }
 0xf7d   : > { %v951_v61 = vpop.permute.xlu0 %950 }
 0xf7e   : > { %v953_v63 = vmul.f32 %v951_v61, %v948_v60 }
 0xf80   : > { %v955_v3 = vadd.f32 %v954_v62, %v953_v63 }
 0xf82   : > { %957 = vrot.lane.b32.xlu1 %v955_v3, %s1576_s16 }
 0xff4   : > { %v958_v6 = vpop.permute.xlu1 %957 }
 0xff5   : > { %961 = vst.msk [vmem:[%s960_s27] sm:$0x3] %vm415_vm2, %v958_v6  ;;  %1490 = vmatmul.mubr.msk.f32.vlgmr.msra.gmra.mxu0 %vm298_vm1, %v958_v6 }
0x10b5   : > { %v1034_v8 = vpop.f32.mrf.mxu0 }
0x10b6   : > { %v1045_v9 = vadd.f32 %v1034_v8, %v1677_v7  ;;  %v1038_v12 = vadd.f32 %v1034_v8, %v965_v11 }
0x10b7   : > { %v1491_v10 = vpop.f32.mrf.mxu0 }
0x10b8   : > { %1047 = vrot.lane.b32.xlu0 %v1045_v9, %s1574_s7  ;;  %v1366_v13 = vmul.f32 -1.442695, %v1038_v12 }
0x10ba   : > { %1552 = vpow2.f32 %v1366_v13 }
0x10c7   : > { %v1553_v14 = vpop.eup %1552 }
0x10c8   : > { %v1042_v15 = vadd.f32 1.0, %v1553_v14 }
0x10ca   : > { %1554 = vrcp.f32 %v1042_v15 }
0x10d7   : > { %v1555_v16 = vpop.eup %1554 }
0x10d8   : > { %v1057_v22 = vsub.f32 1.0, %v1555_v16  ;;  %v1063_v24 = vmul.f32 %v1555_v16, %v955_v3 }
0x112a   : > { %v1048_v17 = vpop.permute.xlu0 %1047 }
0x112b   : > { %v1050_v18 = vmul.f32 %v1555_v16, %v1048_v17 }
0x112d   : > { %1052 = vrot.lane.b32.xlu1 %v1050_v18, %s1574_s7 }
0x119f   : > { %v1053_v19 = vpop.permute.xlu1 %1052 }
0x11a0   : > { %v1055_v20 = vadd.f32 %v1053_v19, %v965_v11 }
0x11a2   : > { %1556 = vtanh.f32 %v1055_v20 }
0x11af   : > { %v1557_v21 = vpop.eup %1556 }
0x11b0   : > { %1059 = vrot.lane.b32.xlu0 %v1557_v21, %s1576_s16 }
0x1222   : > { %v1060_v23 = vpop.permute.xlu0 %1059 }
0x1223   : > { %v1062_v25 = vmul.f32 %v1060_v23, %v1057_v22 }
0x1225   : > { %v1064_v26 = vadd.f32 %v1063_v24, %v1062_v25 }
0x1227   : > { %1066 = vrot.lane.b32.xlu1 %v1064_v26, %s1576_s16 }
0x1299   : > { %v1067_v27 = vpop.permute.xlu1 %1066 }
0x129a   : > { %1070 = vst.msk [vmem:[%s1069_s6] sm:$0x3] %vm415_vm2, %v1067_v27  ;;  %1501 = vmatmul.mubr.msk.f32.vlgmr.msra.gmra.mxu1 %vm298_vm1, %v1067_v27 }
0x135a   : > { %v1143_v28 = vpop.f32.mrf.mxu1 }
0x135b   : > { %v1154_v29 = vadd.f32 %v1143_v28, %v1677_v7  ;;  %v1147_v32 = vadd.f32 %v1143_v28, %v1074_v31 }
0x135c   : > { %v1502_v30 = vpop.f32.mrf.mxu1 }
0x135d   : > { %1156 = vrot.lane.b32.xlu0 %v1154_v29, %s1574_s7  ;;  %v1369_v33 = vmul.f32 -1.442695, %v1147_v32 }
0x135f   : > { %1558 = vpow2.f32 %v1369_v33 }
0x136c   : > { %v1559_v34 = vpop.eup %1558 }
0x136d   : > { %v1151_v35 = vadd.f32 1.0, %v1559_v34 }
0x136f   : > { %1560 = vrcp.f32 %v1151_v35 }
0x137c   : > { %v1561_v36 = vpop.eup %1560 }
0x137d   : > { %v1166_v41 = vsub.f32 1.0, %v1561_v36  ;;  %v1172_v43 = vmul.f32 %v1561_v36, %v1064_v26 }
0x13cf   : > { %v1157_v37 = vpop.permute.xlu0 %1156 }
0x13d0   : > { %v1159_v38 = vmul.f32 %v1561_v36, %v1157_v37 }
0x13d2   : > { %1161 = vrot.lane.b32.xlu1 %v1159_v38, %s1574_s7 }
0x1444   : > { %v1162_v7 = vpop.permute.xlu1 %1161 }
0x1445   : > { %v1164_v39 = vadd.f32 %v1162_v7, %v1074_v31 }
0x1447   : > { %1562 = vtanh.f32 %v1164_v39 }
0x1454   : > { %v1563_v40 = vpop.eup %1562 }
0x1455   : > { %1168 = vrot.lane.b32.xlu0 %v1563_v40, %s1576_s16 }
0x14c7   : > { %v1169_v42 = vpop.permute.xlu0 %1168 }
0x14c8   : > { %v1171_v44 = vmul.f32 %v1169_v42, %v1166_v41 }
0x14ca   : > { %v1173_v45 = vadd.f32 %v1172_v43, %v1171_v44 }
0x14cc   : > { %1175 = vrot.lane.b32.xlu1 %v1173_v45, %s1576_s16 }
0x153e   : > { %v1176_v46 = vpop.permute.xlu1 %1175 }
0x153f   : > { %1179 = vst.msk [vmem:[%s1178_s19] sm:$0x3] %vm415_vm2, %v1176_v46  ;;  %1180 = vst.msk [vmem:[%s286_s12] sm:$0x3] %vm415_vm2, %v1176_v46 }
0x1540 PF: > { %s16_s18 = sadd.s32 1, %s1570_s18  }
0x1541   : > { %p13_p5 = scmp.ge.s32.totalorder %s16_s18, 4  }
0x1543   :  { %15 = sbr.rel (!%p13_p5) target bundleno = 1 (0x1), region = 103 }

</bundles_post_ra>
